<compile_context>
chip_gen: v5e
topology: v5e:2x2
jax: 0.10.0
libtpu: 0.0.40
codegen_flags: <defaults>
</compile_context>

<pallas_src>
import jax
import jax.numpy as jnp
from jax.experimental import pallas as pl
from jax.experimental.pallas import tpu as pltpu

LANE = 128                 # vreg lane width: pad hidden / action dims to this
DEFAULT_BATCH_TILE = 1024  # rows per grid step for large batches (sweepable)
SMALL_BATCH_ALIGN = 16     # bf16 sublane-pair friendly minimum row padding


def _round_up(x, m):
    return ((x + m - 1) // m) * m


# --------------------------------------------------------------------------- #
# Kernel: one batch tile of the actor MLP. Runs entirely in VMEM, dots on MXU. #
# --------------------------------------------------------------------------- #
def policy_kernel(x_ref, w1_ref, b1_ref, w2_ref, b2_ref, w3_ref, b3_ref,
                  mean_ref):
    x = x_ref[...]  # bf16 [TB, S]
    h1 = jnp.tanh(
        jnp.dot(x, w1_ref[...], preferred_element_type=jnp.float32) + b1_ref[...]
    )
    h2 = jnp.tanh(
        jnp.dot(h1.astype(w2_ref.dtype), w2_ref[...],
                preferred_element_type=jnp.float32) + b2_ref[...]
    )
    mean_ref[...] = (
        jnp.dot(h2.astype(w3_ref.dtype), w3_ref[...],
                preferred_element_type=jnp.float32) + b3_ref[...]
    )


# --------------------------------------------------------------------------- #
# Parameter handling                                                           #
# --------------------------------------------------------------------------- #
def init_params(key, state_space, action_space, hidden=64):
    """Deterministic init matching Policy.init_weights():
       Linear weights ~ N(0, 1), biases = 0, sigma = 0.5.
       Weights stored [in, out] (transposed vs. PyTorch) so kernel does x @ W."""
    k1, k2, k3 = jax.random.split(key, 3)
    w1 = jax.random.normal(k1, (state_space, hidden), dtype=jnp.float32)
    w2 = jax.random.normal(k2, (hidden, hidden), dtype=jnp.float32)
    w3 = jax.random.normal(k3, (hidden, action_space), dtype=jnp.float32)
    b1 = jnp.zeros((hidden,), dtype=jnp.float32)
    b2 = jnp.zeros((hidden,), dtype=jnp.float32)
    b3 = jnp.zeros((action_space,), dtype=jnp.float32)
    sigma = jnp.full((action_space,), 0.5, dtype=jnp.float32)
    return (w1, b1, w2, b2, w3, b3, sigma)


def prepare_params(params, compute_dtype=jnp.bfloat16):
    """Zero-pad hidden/action dims to 128 lanes and cast matmul operands to bf16.
       Padded columns of w3/b3 are exactly zero so padded mean columns are zero
       and tanh(0) = 0 keeps padded hidden lanes inert through the chain."""
    w1, b1, w2, b2, w3, b3, sigma = params
    s = w1.shape[0]
    hidden = w1.shape[1]
    a = w3.shape[1]
    hp = _round_up(hidden, LANE)
    ap = _round_up(a, LANE)

    w1p = jnp.zeros((s, hp), compute_dtype).at[:, :hidden].set(w1.astype(compute_dtype))
    b1p = jnp.zeros((1, hp), jnp.float32).at[0, :hidden].set(b1)
    w2p = jnp.zeros((hp, hp), compute_dtype).at[:hidden, :hidden].set(w2.astype(compute_dtype))
    b2p = jnp.zeros((1, hp), jnp.float32).at[0, :hidden].set(b2)
    w3p = jnp.zeros((hp, ap), compute_dtype).at[:hidden, :a].set(w3.astype(compute_dtype))
    b3p = jnp.zeros((1, ap), jnp.float32).at[0, :a].set(b3)
    return (w1p, b1p, w2p, b2p, w3p, b3p, sigma.astype(jnp.float32))


# --------------------------------------------------------------------------- #
# Forward pass                                                                 #
# --------------------------------------------------------------------------- #
def policy_forward(x, prepared, *, batch_tile=DEFAULT_BATCH_TILE):
    """Returns (action_mean [B, A], sigma [A]) — the parameters of the Normal."""
    w1p, b1p, w2p, b2p, w3p, b3p, sigma = prepared
    batch, state_space = x.shape
    hp = w2p.shape[0]
    ap = w3p.shape[1]
    a = sigma.shape[0]

    # Batch tile selection:
    #   small batches  -> single grid step, pad rows only to a 16-row boundary
    #   large batches  -> 1024-row tiles (multiple grid steps, double-buffered)
    if batch <= batch_tile:
        tb = _round_up(batch, SMALL_BATCH_ALIGN)
    else:
        tb = _round_up(batch_tile, SMALL_BATCH_ALIGN)
    b_pad = _round_up(batch, tb)
    num_tiles = b_pad // tb

    x_pad = jnp.zeros((b_pad, state_space), w1p.dtype).at[:batch].set(
        x.astype(w1p.dtype))

    weight_bytes = sum(int(p.size) * p.dtype.itemsize
                       for p in (w1p, b1p, w2p, b2p, w3p, b3p))
    cost = pl.CostEstimate(
        flops=2 * b_pad * (state_space * hp + hp * hp + hp * ap),
        transcendentals=2 * b_pad * hp,
        bytes_accessed=b_pad * (state_space * x_pad.dtype.itemsize + ap * 4)
        + weight_bytes,
    )

    mean_pad = pl.pallas_call(
        policy_kernel,
        out_shape=jax.ShapeDtypeStruct((b_pad, ap), jnp.float32),
        grid=(num_tiles,),
        in_specs=[
            pl.BlockSpec((tb, state_space), lambda i: (i, 0)),  # x tile (streams)
            pl.BlockSpec((state_space, hp), lambda i: (0, 0)),  # w1 (resident)
            pl.BlockSpec((1, hp), lambda i: (0, 0)),            # b1
            pl.BlockSpec((hp, hp), lambda i: (0, 0)),           # w2
            pl.BlockSpec((1, hp), lambda i: (0, 0)),            # b2
            pl.BlockSpec((hp, ap), lambda i: (0, 0)),           # w3 (pad cols = 0)
            pl.BlockSpec((1, ap), lambda i: (0, 0)),            # b3
        ],
        out_specs=pl.BlockSpec((tb, ap), lambda i: (i, 0)),     # lane-dense mean
        compiler_params=pltpu.CompilerParams(
            dimension_semantics=("parallel",)),                 # 2 TCs on v7x
        cost_estimate=cost,
    )(x_pad, w1p, b1p, w2p, b2p, w3p, b3p)

    mean = mean_pad[:batch, :a]
    # sigma softplus hoisted out of the gridded kernel; jax.nn.softplus is the
    # numerically stable form (no overflow for large sigma params).
    sigma_out = jax.nn.softplus(sigma)
    # TODO(synk): the Normal distribution object itself (sampling / log_prob) is
    # host-side glue; the kernel returns its (mean, sigma) parameters.
    return mean, sigma_out


# --------------------------------------------------------------------------- #
# Pure-JAX reference (same padded bf16 operands, f32 accumulation)             #
# --------------------------------------------------------------------------- #
def reference_forward(x, prepared):
    w1p, b1p, w2p, b2p, w3p, b3p, sigma = prepared
    a = sigma.shape[0]
    xb = x.astype(w1p.dtype)
    h1 = jnp.tanh(jnp.dot(xb, w1p, preferred_element_type=jnp.float32) + b1p)
    h2 = jnp.tanh(jnp.dot(h1.astype(w2p.dtype), w2p,
                          preferred_element_type=jnp.float32) + b2p)
    mean = jnp.dot(h2.astype(w3p.dtype), w3p,
                   preferred_element_type=jnp.float32) + b3p
    return mean[:, :a], jax.nn.softplus(sigma)


if __name__ == "__main__":
    state_space = 8
    action_space = 4
    batch = 2

    key = jax.random.PRNGKey(0)
    k_params, k_x = jax.random.split(key)

    raw_params = init_params(k_params, state_space, action_space)
    prepared = prepare_params(raw_params)
    x = jax.random.normal(k_x, (batch, state_space), dtype=jnp.float32)

    mean, sigma = policy_forward(x, prepared)
    jax.block_until_ready((mean, sigma))

    ref_mean, ref_sigma = reference_forward(x, prepared)
    assert mean.shape == (batch, action_space)
    assert sigma.shape == (action_space,)
    assert jnp.allclose(mean, ref_mean, atol=1e-4, rtol=1e-4)
    assert jnp.allclose(sigma, ref_sigma, atol=1e-6, rtol=1e-6)

    print("KERNEL_OK")
</pallas_src>

<mosaic_0001>
module attributes {stable_mosaic.version = 11 : i64} {
  func.func @policy_kernel(%arg0: i32, %arg1: memref<16x8xbf16, #tpu.memory_space<vmem>>, %arg2: memref<8x128xbf16, #tpu.memory_space<vmem>>, %arg3: memref<1x128xf32, #tpu.memory_space<vmem>>, %arg4: memref<128x128xbf16, #tpu.memory_space<vmem>>, %arg5: memref<1x128xf32, #tpu.memory_space<vmem>>, %arg6: memref<128x128xbf16, #tpu.memory_space<vmem>>, %arg7: memref<1x128xf32, #tpu.memory_space<vmem>>, %arg8: memref<16x128xf32, #tpu.memory_space<vmem>>) attributes {dimension_semantics = [#tpu.dimension_semantics<parallel>], iteration_bounds = array<i64: 1>, scalar_prefetch = 0 : i64, scratch_operands = 0 : i64, tpu.core_type = #tpu.core_type<tc>, window_params = [{transform_indices = @transform_0, window_bounds = array<i64: 16, 8>}, {pipeline_mode = #tpu.pipeline_mode<synchronous>, transform_indices = @transform_1, window_bounds = array<i64: 8, 128>}, {pipeline_mode = #tpu.pipeline_mode<synchronous>, transform_indices = @transform_2, window_bounds = array<i64: 1, 128>}, {pipeline_mode = #tpu.pipeline_mode<synchronous>, transform_indices = @transform_3, window_bounds = array<i64: 128, 128>}, {pipeline_mode = #tpu.pipeline_mode<synchronous>, transform_indices = @transform_4, window_bounds = array<i64: 1, 128>}, {pipeline_mode = #tpu.pipeline_mode<synchronous>, transform_indices = @transform_5, window_bounds = array<i64: 128, 128>}, {pipeline_mode = #tpu.pipeline_mode<synchronous>, transform_indices = @transform_6, window_bounds = array<i64: 1, 128>}, {transform_indices = @transform_7, window_bounds = array<i64: 16, 128>}]} {
    %c0 = arith.constant 0 : index
    %c0_0 = arith.constant 0 : index
    %0 = vector.load %arg1[%c0, %c0_0] : memref<16x8xbf16, #tpu.memory_space<vmem>>, vector<16x8xbf16>
    %c0_1 = arith.constant 0 : index
    %c0_2 = arith.constant 0 : index
    %1 = vector.load %arg2[%c0_1, %c0_2] : memref<8x128xbf16, #tpu.memory_space<vmem>>, vector<8x128xbf16>
    %cst = arith.constant dense<0.000000e+00> : vector<16x128xf32>
    %2 = tpu.matmul %0, %1, %cst {dimension_numbers = #tpu.dot_dimension_numbers<[1], [0], [0], [1], [0, 0, 1, 1], [], []>} : vector<16x8xbf16>, vector<8x128xbf16>, vector<16x128xf32> -> vector<16x128xf32>
    %c0_3 = arith.constant 0 : index
    %c0_4 = arith.constant 0 : index
    %3 = vector.load %arg3[%c0_3, %c0_4] : memref<1x128xf32, #tpu.memory_space<vmem>>, vector<1x128xf32>
    %4 = vector.broadcast %3 : vector<1x128xf32> to vector<16x128xf32>
    %5 = arith.addf %2, %4 : vector<16x128xf32>
    %6 = math.tanh %5 : vector<16x128xf32>
    %7 = arith.truncf %6 : vector<16x128xf32> to vector<16x128xbf16>
    %c0_5 = arith.constant 0 : index
    %c0_6 = arith.constant 0 : index
    %8 = vector.load %arg4[%c0_5, %c0_6] : memref<128x128xbf16, #tpu.memory_space<vmem>>, vector<128x128xbf16>
    %cst_7 = arith.constant dense<0.000000e+00> : vector<16x128xf32>
    %9 = tpu.matmul %7, %8, %cst_7 {dimension_numbers = #tpu.dot_dimension_numbers<[1], [0], [0], [1], [0, 0, 1, 1], [], []>} : vector<16x128xbf16>, vector<128x128xbf16>, vector<16x128xf32> -> vector<16x128xf32>
    %c0_8 = arith.constant 0 : index
    %c0_9 = arith.constant 0 : index
    %10 = vector.load %arg5[%c0_8, %c0_9] : memref<1x128xf32, #tpu.memory_space<vmem>>, vector<1x128xf32>
    %11 = vector.broadcast %10 : vector<1x128xf32> to vector<16x128xf32>
    %12 = arith.addf %9, %11 : vector<16x128xf32>
    %13 = math.tanh %12 : vector<16x128xf32>
    %14 = arith.truncf %13 : vector<16x128xf32> to vector<16x128xbf16>
    %c0_10 = arith.constant 0 : index
    %c0_11 = arith.constant 0 : index
    %15 = vector.load %arg6[%c0_10, %c0_11] : memref<128x128xbf16, #tpu.memory_space<vmem>>, vector<128x128xbf16>
    %cst_12 = arith.constant dense<0.000000e+00> : vector<16x128xf32>
    %16 = tpu.matmul %14, %15, %cst_12 {dimension_numbers = #tpu.dot_dimension_numbers<[1], [0], [0], [1], [0, 0, 1, 1], [], []>} : vector<16x128xbf16>, vector<128x128xbf16>, vector<16x128xf32> -> vector<16x128xf32>
    %c0_13 = arith.constant 0 : index
    %c0_14 = arith.constant 0 : index
    %17 = vector.load %arg7[%c0_13, %c0_14] : memref<1x128xf32, #tpu.memory_space<vmem>>, vector<1x128xf32>
    %18 = vector.broadcast %17 : vector<1x128xf32> to vector<16x128xf32>
    %19 = arith.addf %16, %18 : vector<16x128xf32>
    %c0_15 = arith.constant 0 : index
    %c0_16 = arith.constant 0 : index
    %20 = vector.load %arg8[%c0_15, %c0_16] : memref<16x128xf32, #tpu.memory_space<vmem>>, vector<16x128xf32>
    tpu.vector_store %arg8[%c0_15, %c0_16], %19 {strides = array<i32>} : memref<16x128xf32, #tpu.memory_space<vmem>>, vector<16x128xf32>,
    return
  }
  func.func @transform_0(%arg0: i32) -> (i32, i32) {
    %c0_i32 = arith.constant 0 : i32
    %c0_i32_0 = arith.constant 0 : i32
    return %arg0, %c0_i32 : i32, i32
  }
  func.func @transform_1(%arg0: i32) -> (i32, i32) {
    %c0_i32 = arith.constant 0 : i32
    %c0_i32_0 = arith.constant 0 : i32
    %c0_i32_1 = arith.constant 0 : i32
    return %c0_i32, %c0_i32_0 : i32, i32
  }
  func.func @transform_2(%arg0: i32) -> (i32, i32) {
    %c0_i32 = arith.constant 0 : i32
    %c0_i32_0 = arith.constant 0 : i32
    %c0_i32_1 = arith.constant 0 : i32
    return %c0_i32, %c0_i32_0 : i32, i32
  }
  func.func @transform_3(%arg0: i32) -> (i32, i32) {
    %c0_i32 = arith.constant 0 : i32
    %c0_i32_0 = arith.constant 0 : i32
    %c0_i32_1 = arith.constant 0 : i32
    return %c0_i32, %c0_i32_0 : i32, i32
  }
  func.func @transform_4(%arg0: i32) -> (i32, i32) {
    %c0_i32 = arith.constant 0 : i32
    %c0_i32_0 = arith.constant 0 : i32
    %c0_i32_1 = arith.constant 0 : i32
    return %c0_i32, %c0_i32_0 : i32, i32
  }
  func.func @transform_5(%arg0: i32) -> (i32, i32) {
    %c0_i32 = arith.constant 0 : i32
    %c0_i32_0 = arith.constant 0 : i32
    %c0_i32_1 = arith.constant 0 : i32
    return %c0_i32, %c0_i32_0 : i32, i32
  }
  func.func @transform_6(%arg0: i32) -> (i32, i32) {
    %c0_i32 = arith.constant 0 : i32
    %c0_i32_0 = arith.constant 0 : i32
    %c0_i32_1 = arith.constant 0 : i32
    return %c0_i32, %c0_i32_0 : i32, i32
  }
  func.func @transform_7(%arg0: i32) -> (i32, i32) {
    %c0_i32 = arith.constant 0 : i32
    %c0_i32_0 = arith.constant 0 : i32
    return %arg0, %c0_i32 : i32, i32
  }
}

</mosaic_0001>

<bundles_post_ra>
// kernel: tpu_custom_call.1
= control target key start
LH: loop header
LB: loop body
LE: loop exit
PB: predicated region body
PF: predicated region fallthrough
CT: control target
= control target key end

     0   :  { %12 = vsyncpa [#allocation3], 0  ;;  %s539_s0 = inlined_call_operand.vmem [shape: bf16[16,8], index: 0, kind: input, shape index: {}]   ;;  %s540_s1 = inlined_call_operand.vmem [shape: bf16[8,128], index: 1, kind: input, shape index: {}]   ;;  %s541_s2 = inlined_call_operand.vmem [shape: f32[1,128], index: 2, kind: input, shape index: {}]   ;;  %s542_s3 = inlined_call_operand.hbm [shape: bf16[128,128], index: 3, kind: input, shape index: {}]   ;;  %s543_s4 = inlined_call_operand.vmem [shape: f32[1,128], index: 4, kind: input, shape index: {}]   ;;  %s544_s5 = inlined_call_operand.hbm [shape: bf16[128,128], index: 5, kind: input, shape index: {}]   ;;  %s545_s6 = inlined_call_operand.vmem [shape: f32[1,128], index: 6, kind: input, shape index: {}]   ;;  %s546_s7 = inlined_call_operand.hbm [shape: f32[16,128], index: 7, kind: output, shape index: {}]  }
   0x1   :  { %13 = vsyncpa [#allocation6], 0 }
   0x2   :  { %14 = vsyncpa [#allocation4], 0  ;;  %s25_s26 = sshll.u32 %s542_s3, 4  ;;  %s468_s27 = smov [#allocation2]   ;;  %s26_s26 = int_to_ptr.hbm [resolvable:$true] %s25_s26 }
   0x3   :  { %s27_s28 = sshll.u32 %s468_s27, 4  ;;  %s40_s8 = sshll.u32 %s544_s5, 4  ;;  %s28_s28 = int_to_ptr.vmem [resolvable:$true] %s27_s28  ;;  %s41_s8 = int_to_ptr.hbm [resolvable:$true] %s40_s8 }
   0x4   :  { %s469_s9 = smov 64   ;;  %s470_s10 = smov 4  }
   0x5   :  { %33 = dma.hbm_to_vmem [thread:$0]  %s26_s26, 1024, %s28_s28, [#allocation3], %s469_s9, %s469_s9, %s470_s10  }
   0x6   :  { %s471_s11 = smov [#allocation5]  }
   0x7   :  { %s42_s12 = sshll.u32 %s471_s11, 4  ;;  %s43_s12 = int_to_ptr.vmem [resolvable:$true] %s42_s12 }
   0x8   :  { %48 = dma.hbm_to_vmem [thread:$0]  %s41_s8, 1024, %s43_s12, [#allocation6], %s469_s9, %s469_s9, %s470_s10  }
   0x9   :  { %462 = dma.done.wait [#allocation3], 1024  }
   0xa   :  { %463 = vsyncadd [#allocation3], 4294966272 }
   0xb   :  { %464 = dma.done.wait [#allocation6], 1024  }
   0xc   :  { %465 = vsyncadd [#allocation6], 4294966272  ;;  %vm76_vm0 = vcmask 1043456   ;;  %v62_v0 = vld [vmem:[%s540_s1] sm:$0xf]  ;;  %v363_v1 = vld [vmem:[#allocation2 + $0x38] sm:$0xff] }
   0xd   :  { %v78_v2 = vsel %vm76_vm0, %v62_v0, 0  ;;  %v355_v3 = vld [vmem:[%s539_s0] sm:$0xff]  ;;  %vm72_vm1 = vcmask 64512   ;;  %165 = vmatpush.bf16.msra.mxu1 %v363_v1  ;;  %v362_v4 = vld [vmem:[#allocation2 + $0x30] sm:$0xff]  ;;  %v361_v5 = vld [vmem:[#allocation2 + $0x28] sm:$0xff]  ;;  %s472_s18 = smov [#allocation7]  }
   0xe   :  { %87 = vmatpush.bf16.msra.mxu0 %v78_v2  ;;  %v360_v6 = vld [vmem:[#allocation2 + $0x20] sm:$0xff]  ;;  %v359_v7 = vld [vmem:[#allocation2 + $0x18] sm:$0xff]  ;;  %v358_v8 = vld [vmem:[#allocation2 + $0x10] sm:$0xff]  ;;  %s270_s19 = sshll.u32 %s472_s18, 4  ;;  %s272_s21 = sshll.u32 %s546_s7, 4  ;;  %s271_s19 = int_to_ptr.vmem [resolvable:$true] %s270_s19  ;;  %s273_s21 = int_to_ptr.hbm [resolvable:$true] %s272_s21 }
   0xf   :  { %v357_v9 = vld [vmem:[#allocation2 + $0x8] sm:$0xff]  ;;  %v356_v10 = vld [vmem:[#allocation2] sm:$0xff]  ;;  %v371_v11 = vld [vmem:[#allocation5 + $0x38] sm:$0xff]  ;;  %s473_s22 = smov 128   ;;  %s474_s23 = smov 8  }
  0x10   :  { %250 = vmatpush.bf16.msra.mxu2 %v371_v11  ;;  %v370_v12 = vld [vmem:[#allocation5 + $0x30] sm:$0xff]  ;;  %v369_v13 = vld [vmem:[#allocation5 + $0x28] sm:$0xff]  ;;  %v379_v15 = vld [vmem:[%s541_s2] ss:$0 sm:$0xff] }
  0x11   :  { %290 = vmatmul.msk.bf16.vlgmr.msra.gmra.mxu0 %vm72_vm1, %v355_v3  ;;  %166 = vmatpush.bf16.msra.mxu1 %v362_v4  ;;  %v368_v22 = vld [vmem:[#allocation5 + $0x20] sm:$0xff]  ;;  %v367_v23 = vld [vmem:[#allocation5 + $0x18] sm:$0xff]  ;;  %v366_v24 = vld [vmem:[#allocation5 + $0x10] sm:$0xff] }
  0x12   :  { %v365_v25 = vld [vmem:[#allocation5 + $0x8] sm:$0xff]  ;;  %v364_v26 = vld [vmem:[#allocation5] sm:$0xff] }
  0x13   :  { %v380_v28 = vld [vmem:[%s543_s4] ss:$0 sm:$0xff] }
  0x14   :  { %251 = vmatpush.bf16.msra.mxu2 %v370_v12  ;;  %v381_v35 = vld [vmem:[%s545_s6] ss:$0 sm:$0xff] }
  0x15   :  { %167 = vmatpush.bf16.msra.mxu1 %v361_v5 }
  0x18   :  { %252 = vmatpush.bf16.msra.mxu2 %v369_v13 }
  0x19   :  { %168 = vmatpush.bf16.msra.mxu1 %v360_v6 }
  0x1c   :  { %253 = vmatpush.bf16.msra.mxu2 %v368_v22 }
  0x1d   :  { %169 = vmatpush.bf16.msra.mxu1 %v359_v7 }
  0x20   :  { %254 = vmatpush.bf16.msra.mxu2 %v367_v23 }
  0x21   :  { %170 = vmatpush.bf16.msra.mxu1 %v358_v8 }
  0x24   :  { %255 = vmatpush.bf16.msra.mxu2 %v366_v24 }
  0x25   :  { %171 = vmatpush.bf16.msra.mxu1 %v357_v9 }
  0x28   :  { %256 = vmatpush.bf16.msra.mxu2 %v365_v25 }
  0x29   :  { %172 = vmatpush.bf16.msra.mxu1 %v356_v10 }
  0x2c   :  { %257 = vmatpush.bf16.msra.mxu2 %v364_v26 }
  0x8e   :  { %v89_v14 = vpop.f32.mrf.mxu0 }
  0x8f   :  { %v90_v16 = vadd.f32 %v379_v15, %v89_v14 }
  0x91   :  { %382 = vtanh.f32 %v90_v16 }
  0x96   :  { %v91_v17 = vpop.f32.mrf.mxu0 }
  0x97   :  { %v92_v18 = vadd.f32 %v379_v15, %v91_v17  ;;  %v383_v19 = vpop.eup %382 }
  0x99   :  { %384 = vtanh.f32 %v92_v18 }
  0x9f   :  { %v385_v20 = vpop.eup %384 }
  0xa0   :  { %v96_v21 = vpack.c.bf16 %v385_v20, %v383_v19 }
  0xa2   :  { %173 = vmatmul.bf16.vlgmr.msra.gmra.mxu1 %v96_v21 }
 0x11f   :  { %v174_v27 = vpop.f32.mrf.mxu1 }
 0x120   :  { %v175_v29 = vadd.f32 %v380_v28, %v174_v27 }
 0x122   :  { %386 = vtanh.f32 %v175_v29 }
 0x127   :  { %v176_v30 = vpop.f32.mrf.mxu1 }
 0x128   :  { %v177_v31 = vadd.f32 %v380_v28, %v176_v30  ;;  %v387_v32 = vpop.eup %386 }
 0x12a   :  { %388 = vtanh.f32 %v177_v31 }
 0x130   :  { %v389_v33 = vpop.eup %388 }
 0x131   :  { %v181_v34 = vpack.c.bf16 %v389_v33, %v387_v32 }
 0x133   :  { %258 = vmatmul.bf16.vlgmr.msra.gmra.mxu2 %v181_v34 }
 0x1b6   :  { %v259_v36 = vpop.f32.mrf.mxu2 }
 0x1b7   :  { %v260_v37 = vadd.f32 %v381_v35, %v259_v36 }
 0x1b9   :  { %264 = vst [vmem:[#allocation7] sm:$0xff] %v260_v37 }
 0x1be   :  { %v261_v38 = vpop.f32.mrf.mxu2 }
 0x1bf   :  { %v262_v39 = vadd.f32 %v381_v35, %v261_v38 }
 0x1c1   :  { %265 = vst [vmem:[#allocation7 + $0x8] sm:$0xff] %v262_v39 }
 0x1c2   :  { %278 = dma.vmem_to_hbm [thread:$0]  %s271_s19, 256, %s273_s21, [#allocation4], %s473_s22, %s473_s22, %s474_s23  }
 0x1c3   :  { %466 = dma.done.wait [#allocation4], 256  }
 0x1c4   :  { %467 = vsyncadd [#allocation4], 4294967040 }
 0x1c5   :  { %283 = vsyncpa [#allocation3], 1 }
 0x1c6   :  { %284 = vsyncpa [#allocation6], 1 }
 0x1c7   :  { %285 = vsyncpa [#allocation4], 1 }

</bundles_post_ra>
